<compile_context>
chip_gen: v7x
topology: tpu7x:2x2x1
jax: 0.10.0
libtpu: 0.0.40
codegen_flags: <defaults>
</compile_context>

<pallas_src>
import jax
import jax.numpy as jnp
from jax.experimental import pallas as pl
from jax.experimental.pallas import tpu as pltpu

N_EMBD = 64
N_HEAD = 4
BLOCK_SIZE = 32  # max sequence length of the PyTorch tril buffer
LN_EPS = 1e-5
ROWS_PER_STEP = 1024  # target Bt*T rows per grid step


def block_kernel(x_ref, wqkv_ref, wp_ref, bp_ref, w1_ref, b1_ref,
                 w2_ref, b2_ref, g1_ref, beta1_ref, g2_ref, beta2_ref,
                 o_ref):
    Bt, T, C = x_ref.shape
    hs = C // N_HEAD
    # (Bt, T, C) -> (Bt*T, C): merging leading dims is layout-free.
    x = x_ref[...].reshape(Bt * T, C)

    # ---------------- LayerNorm 1 (row-wise over the whole slab) ----------------
    mu = jnp.mean(x, axis=-1, keepdims=True)
    var = jnp.mean((x - mu) ** 2, axis=-1, keepdims=True)
    h = (x - mu) * jax.lax.rsqrt(var + LN_EPS)
    h = h * g1_ref[...] + beta1_ref[...]                      # (1, C) broadcasts

    # ---------------- fused QKV projection: one (M,64)@(64,192) matmul ----------
    qkv = jnp.dot(h, wqkv_ref[...], preferred_element_type=jnp.float32)  # (M, 3C)
    scale = 1.0 / (C ** 0.5)            # reference divides by sqrt(n_embd)
    q = qkv[:, :C] * scale              # fold scale into q once (cheapest place)
    k = qkv[:, C:2 * C]
    v = qkv[:, 2 * C:]

    row = jax.lax.broadcasted_iota(jnp.int32, (T, T), 0)
    col = jax.lax.broadcasted_iota(jnp.int32, (T, T), 1)
    causal = (col <= row)[None, :, :]   # (1, T, T), hoisted out of head loop

    # --------- attention: batched over Bt, static 4-way loop over heads ---------
    head_outs = []
    for hd in range(N_HEAD):
        sl = slice(hd * hs, (hd + 1) * hs)
        qh = q[:, sl].reshape(Bt, T, hs)
        kh = k[:, sl].reshape(Bt, T, hs)
        vh = v[:, sl].reshape(Bt, T, hs)
        s = jnp.einsum('btd,bsd->bts', qh, kh,
                       preferred_element_type=jnp.float32)               # (Bt, T, T)
        s = jnp.where(causal, s, -jnp.inf)
        s = s - jnp.max(s, axis=-1, keepdims=True)
        p = jnp.exp(s)
        inv = pl.reciprocal(jnp.sum(p, axis=-1, keepdims=True))          # exact 1/x
        oh = jnp.einsum('bts,bsd->btd', p, vh,
                        preferred_element_type=jnp.float32) * inv        # (Bt, T, hs)
        head_outs.append(oh.reshape(Bt * T, hs))

    # head concat along lanes, then ONE full-depth (K=64) output projection
    attn = jnp.concatenate(head_outs, axis=-1)                           # (M, C)
    sa = jnp.dot(attn, wp_ref[...], preferred_element_type=jnp.float32) + bp_ref[...]
    x1 = x + sa                                                          # residual 1

    # ---------------- LayerNorm 2 ----------------
    mu2 = jnp.mean(x1, axis=-1, keepdims=True)
    var2 = jnp.mean((x1 - mu2) ** 2, axis=-1, keepdims=True)
    h2 = (x1 - mu2) * jax.lax.rsqrt(var2 + LN_EPS)
    h2 = h2 * g2_ref[...] + beta2_ref[...]

    # ---------------- FeedForward: Linear -> ReLU -> Linear ----------------
    f = jnp.dot(h2, w1_ref[...], preferred_element_type=jnp.float32) + b1_ref[...]
    f = jnp.maximum(f, 0.0)
    f = jnp.dot(f, w2_ref[...], preferred_element_type=jnp.float32) + b2_ref[...]

    # single fused residual store (one write per block)
    o_ref[...] = (x1 + f).reshape(Bt, T, C)


def _rep_spec(shape):
    # Constant block index -> Pallas skips re-DMA of weights across grid steps.
    n = len(shape)
    return pl.BlockSpec(shape, lambda b, _n=n: (0,) * _n)


def _choose_bt(B, T):
    """Batch elements per grid step: aim for ~ROWS_PER_STEP matmul rows per
    block (amortizes per-step pipeline overhead, fills the MXU) while keeping
    the VMEM footprint tiny."""
    bt = max(1, min(B, max(1, ROWS_PER_STEP // T)))
    # keep >=2 grid steps when there is enough work, so the "parallel" batch
    # axis can shard across v7x's two TensorCores
    if bt == B and B >= 2 and B * T >= 256:
        bt = pl.cdiv(B, 2)
    return bt


@jax.jit
def block_forward(x, params):
    B, T, C = x.shape
    bt = _choose_bt(B, T)
    nb = pl.cdiv(B, bt)
    Bp = nb * bt
    xp = x if Bp == B else jnp.pad(x, ((0, Bp - B), (0, 0), (0, 0)))

    # fuse q/k/v weights -> single (C, 3C) matmul operand
    wqkv = jnp.concatenate([params["wq"], params["wk"], params["wv"]], axis=1)
    plist = [wqkv, params["wp"], params["bp"], params["w1"], params["b1"],
             params["w2"], params["b2"], params["g1"], params["beta1"],
             params["g2"], params["beta2"]]

    in_specs = [pl.BlockSpec((bt, T, C), lambda b: (b, 0, 0))]
    in_specs += [_rep_spec(p.shape) for p in plist]

    out = pl.pallas_call(
        block_kernel,
        out_shape=jax.ShapeDtypeStruct((Bp, T, C), jnp.float32),
        grid=(nb,),
        in_specs=in_specs,
        out_specs=pl.BlockSpec((bt, T, C), lambda b: (b, 0, 0)),
        compiler_params=pltpu.CompilerParams(
            dimension_semantics=("parallel",)),
    )(xp, *plist)
    return out[:B] if Bp != B else out


# ---------------- pure-JAX reference (for correctness check) ----------------
def block_ref(x, p):
    def ln(z, g, b):
        mu = z.mean(-1, keepdims=True)
        var = ((z - mu) ** 2).mean(-1, keepdims=True)
        return (z - mu) / jnp.sqrt(var + LN_EPS) * g + b

    B, T, C = x.shape
    hs = C // N_HEAD
    h = ln(x, p["g1"], p["beta1"])
    q, k, v = h @ p["wq"], h @ p["wk"], h @ p["wv"]
    mask = jnp.tril(jnp.ones((T, T), bool))
    outs = []
    for hd in range(N_HEAD):
        qh = q[..., hd * hs:(hd + 1) * hs]
        kh = k[..., hd * hs:(hd + 1) * hs]
        vh = v[..., hd * hs:(hd + 1) * hs]
        s = qh @ kh.transpose(0, 2, 1) / (C ** 0.5)
        s = jnp.where(mask, s, -jnp.inf)
        outs.append(jax.nn.softmax(s, axis=-1) @ vh)
    x1 = x + (jnp.concatenate(outs, -1) @ p["wp"] + p["bp"])
    h2 = ln(x1, p["g2"], p["beta2"])
    f = jnp.maximum(h2 @ p["w1"] + p["b1"], 0.0) @ p["w2"] + p["b2"]
    return x1 + f


def init_params(key):
    ks = jax.random.split(key, 12)
    C, H = N_EMBD, 4 * N_EMBD
    u = lambda k, shape, fan_in: jax.random.uniform(
        k, shape, jnp.float32, -1.0 / (fan_in ** 0.5), 1.0 / (fan_in ** 0.5))
    return {
        # per-head q/k/v (bias=False) stacked into (C, C); head h -> cols [h*hs:(h+1)*hs]
        "wq": u(ks[0], (C, C), C),
        "wk": u(ks[1], (C, C), C),
        "wv": u(ks[2], (C, C), C),
        "wp": u(ks[3], (C, C), C),
        "bp": u(ks[4], (1, C), C),
        "w1": u(ks[5], (C, H), C),
        "b1": u(ks[6], (1, H), C),
        "w2": u(ks[7], (H, C), H),
        "b2": u(ks[8], (1, C), H),
        "g1": jnp.ones((1, C), jnp.float32),
        "beta1": jnp.zeros((1, C), jnp.float32),
        "g2": jnp.ones((1, C), jnp.float32),
        "beta2": jnp.zeros((1, C), jnp.float32),
    }


if __name__ == "__main__":
    key = jax.random.PRNGKey(0)
    k_x, k_x2, k_p = jax.random.split(key, 3)
    params = init_params(k_p)

    # small case (matches the module's implied shapes: batch=2, seq=8, embd=64)
    B, T = 2, 8
    x = jax.random.normal(k_x, (B, T, N_EMBD), jnp.float32)
    out = jax.block_until_ready(block_forward(x, params))
    ref = block_ref(x, params)
    assert out.shape == (B, T, N_EMBD)
    assert jnp.allclose(out, ref, atol=1e-4, rtol=1e-4), float(
        jnp.max(jnp.abs(out - ref)))

    # larger case: exercises the multi-block grid + batch padding path
    B2, T2 = 37, BLOCK_SIZE
    x2 = jax.random.normal(k_x2, (B2, T2, N_EMBD), jnp.float32)
    out2 = jax.block_until_ready(block_forward(x2, params))
    ref2 = block_ref(x2, params)
    assert out2.shape == (B2, T2, N_EMBD)
    assert jnp.allclose(out2, ref2, atol=1e-4, rtol=1e-4), float(
        jnp.max(jnp.abs(out2 - ref2)))

    print("KERNEL_OK")
</pallas_src>

<mosaic_0001>
module attributes {stable_mosaic.version = 11 : i64} {
  func.func @block_kernel(%arg0: i32, %arg1: memref<2x8x64xf32, #tpu.memory_space<vmem>>, %arg2: memref<64x192xf32, #tpu.memory_space<vmem>>, %arg3: memref<64x64xf32, #tpu.memory_space<vmem>>, %arg4: memref<1x64xf32, #tpu.memory_space<vmem>>, %arg5: memref<64x256xf32, #tpu.memory_space<vmem>>, %arg6: memref<1x256xf32, #tpu.memory_space<vmem>>, %arg7: memref<256x64xf32, #tpu.memory_space<vmem>>, %arg8: memref<1x64xf32, #tpu.memory_space<vmem>>, %arg9: memref<1x64xf32, #tpu.memory_space<vmem>>, %arg10: memref<1x64xf32, #tpu.memory_space<vmem>>, %arg11: memref<1x64xf32, #tpu.memory_space<vmem>>, %arg12: memref<1x64xf32, #tpu.memory_space<vmem>>, %arg13: memref<2x8x64xf32, #tpu.memory_space<vmem>>) attributes {dimension_semantics = [#tpu.dimension_semantics<parallel>], iteration_bounds = array<i64: 1>, scalar_prefetch = 0 : i64, scratch_operands = 0 : i64, tpu.core_type = #tpu.core_type<tc>, window_params = [{transform_indices = @transform_0, window_bounds = array<i64: 2, 8, 64>}, {pipeline_mode = #tpu.pipeline_mode<synchronous>, transform_indices = @transform_1, window_bounds = array<i64: 64, 192>}, {pipeline_mode = #tpu.pipeline_mode<synchronous>, transform_indices = @transform_2, window_bounds = array<i64: 64, 64>}, {pipeline_mode = #tpu.pipeline_mode<synchronous>, transform_indices = @transform_3, window_bounds = array<i64: 1, 64>}, {pipeline_mode = #tpu.pipeline_mode<synchronous>, transform_indices = @transform_4, window_bounds = array<i64: 64, 256>}, {pipeline_mode = #tpu.pipeline_mode<synchronous>, transform_indices = @transform_5, window_bounds = array<i64: 1, 256>}, {pipeline_mode = #tpu.pipeline_mode<synchronous>, transform_indices = @transform_6, window_bounds = array<i64: 256, 64>}, {pipeline_mode = #tpu.pipeline_mode<synchronous>, transform_indices = @transform_7, window_bounds = array<i64: 1, 64>}, {pipeline_mode = #tpu.pipeline_mode<synchronous>, transform_indices = @transform_8, window_bounds = array<i64: 1, 64>}, {pipeline_mode = #tpu.pipeline_mode<synchronous>, transform_indices = @transform_9, window_bounds = array<i64: 1, 64>}, {pipeline_mode = #tpu.pipeline_mode<synchronous>, transform_indices = @transform_10, window_bounds = array<i64: 1, 64>}, {pipeline_mode = #tpu.pipeline_mode<synchronous>, transform_indices = @transform_11, window_bounds = array<i64: 1, 64>}, {transform_indices = @transform_12, window_bounds = array<i64: 2, 8, 64>}]} {
    %c0 = arith.constant 0 : index
    %c0_0 = arith.constant 0 : index
    %c0_1 = arith.constant 0 : index
    %0 = vector.load %arg1[%c0, %c0_0, %c0_1] : memref<2x8x64xf32, #tpu.memory_space<vmem>>, vector<2x8x64xf32>
    %1 = vector.shape_cast %0 : vector<2x8x64xf32> to vector<16x64xf32>
    %cst = arith.constant dense<0.000000e+00> : vector<16xf32>
    %2 = vector.multi_reduction <add>, %1, %cst [1] : vector<16x64xf32> to vector<16xf32>
    %3 = vector.shape_cast %2 : vector<16xf32> to vector<16x1xf32>
    %cst_2 = arith.constant 6.400000e+01 : f32
    %4 = vector.broadcast %cst_2 : f32 to vector<16x1xf32>
    %5 = arith.divf %3, %4 : vector<16x1xf32>
    %6 = vector.broadcast %5 : vector<16x1xf32> to vector<16x64xf32>
    %7 = arith.subf %1, %6 : vector<16x64xf32>
    %8 = arith.mulf %7, %7 : vector<16x64xf32>
    %cst_3 = arith.constant dense<0.000000e+00> : vector<16xf32>
    %9 = vector.multi_reduction <add>, %8, %cst_3 [1] : vector<16x64xf32> to vector<16xf32>
    %10 = vector.shape_cast %9 : vector<16xf32> to vector<16x1xf32>
    %cst_4 = arith.constant 6.400000e+01 : f32
    %11 = vector.broadcast %cst_4 : f32 to vector<16x1xf32>
    %12 = arith.divf %10, %11 : vector<16x1xf32>
    %13 = vector.broadcast %5 : vector<16x1xf32> to vector<16x64xf32>
    %14 = arith.subf %1, %13 : vector<16x64xf32>
    %cst_5 = arith.constant 9.99999974E-6 : f32
    %15 = vector.broadcast %cst_5 : f32 to vector<16x1xf32>
    %16 = arith.addf %12, %15 : vector<16x1xf32>
    %17 = math.rsqrt %16 : vector<16x1xf32>
    %18 = vector.broadcast %17 : vector<16x1xf32> to vector<16x64xf32>
    %19 = arith.mulf %14, %18 : vector<16x64xf32>
    %c0_6 = arith.constant 0 : index
    %c0_7 = arith.constant 0 : index
    %20 = vector.load %arg9[%c0_6, %c0_7] : memref<1x64xf32, #tpu.memory_space<vmem>>, vector<1x64xf32>
    %21 = vector.broadcast %20 : vector<1x64xf32> to vector<16x64xf32>
    %22 = arith.mulf %19, %21 : vector<16x64xf32>
    %c0_8 = arith.constant 0 : index
    %c0_9 = arith.constant 0 : index
    %23 = vector.load %arg10[%c0_8, %c0_9] : memref<1x64xf32, #tpu.memory_space<vmem>>, vector<1x64xf32>
    %24 = vector.broadcast %23 : vector<1x64xf32> to vector<16x64xf32>
    %25 = arith.addf %22, %24 : vector<16x64xf32>
    %c0_10 = arith.constant 0 : index
    %c0_11 = arith.constant 0 : index
    %26 = vector.load %arg2[%c0_10, %c0_11] : memref<64x192xf32, #tpu.memory_space<vmem>>, vector<64x192xf32>
    %cst_12 = arith.constant dense<0.000000e+00> : vector<16x192xf32>
    %27 = tpu.matmul %25, %26, %cst_12 {dimension_numbers = #tpu.dot_dimension_numbers<[1], [0], [0], [1], [0, 0, 1, 1], [], []>} : vector<16x64xf32>, vector<64x192xf32>, vector<16x192xf32> -> vector<16x192xf32>
    %28 = vector.extract_strided_slice %27 {offsets = [0, 0], sizes = [16, 64], strides = [1, 1]} : vector<16x192xf32> to vector<16x64xf32>
    %cst_13 = arith.constant 1.250000e-01 : f32
    %29 = vector.broadcast %cst_13 : f32 to vector<16x64xf32>
    %30 = arith.mulf %28, %29 : vector<16x64xf32>
    %31 = vector.extract_strided_slice %27 {offsets = [0, 64], sizes = [16, 64], strides = [1, 1]} : vector<16x192xf32> to vector<16x64xf32>
    %32 = vector.extract_strided_slice %27 {offsets = [0, 128], sizes = [16, 64], strides = [1, 1]} : vector<16x192xf32> to vector<16x64xf32>
    %33 = tpu.iota {dimensions = array<i32: 0>} : vector<8x8xi32>
    %34 = tpu.iota {dimensions = array<i32: 1>} : vector<8x8xi32>
    %35 = arith.cmpi sle, %34, %33 : vector<8x8xi32>
    %36 = vector.shape_cast %35 : vector<8x8xi1> to vector<1x8x8xi1>
    %37 = vector.extract_strided_slice %30 {offsets = [0, 0], sizes = [16, 16], strides = [1, 1]} : vector<16x64xf32> to vector<16x16xf32>
    %38 = vector.shape_cast %37 : vector<16x16xf32> to vector<2x8x16xf32>
    %39 = vector.extract_strided_slice %31 {offsets = [0, 0], sizes = [16, 16], strides = [1, 1]} : vector<16x64xf32> to vector<16x16xf32>
    %40 = vector.shape_cast %39 : vector<16x16xf32> to vector<2x8x16xf32>
    %41 = vector.extract_strided_slice %32 {offsets = [0, 0], sizes = [16, 16], strides = [1, 1]} : vector<16x64xf32> to vector<16x16xf32>
    %42 = vector.shape_cast %41 : vector<16x16xf32> to vector<2x8x16xf32>
    "tpu.trace_start"() <{level = 10 : i32, message = "btd,bsd->bts"}> : () -> ()
    %cst_14 = arith.constant dense<0.000000e+00> : vector<2x8x8xf32>
    %43 = tpu.matmul %38, %40, %cst_14 {dimension_numbers = #tpu.dot_dimension_numbers<[2], [2], [1], [1], [0, 0, 0, 1, 1, 1], [0], [0]>} : vector<2x8x16xf32>, vector<2x8x16xf32>, vector<2x8x8xf32> -> vector<2x8x8xf32>
    %cst_15 = arith.constant 0xFF800000 : f32
    "tpu.trace_stop"() : () -> ()
    %44 = vector.shape_cast %36 : vector<1x8x8xi1> to vector<1x8x8xi1>
    %45 = vector.broadcast %44 : vector<1x8x8xi1> to vector<2x8x8xi1>
    %46 = vector.broadcast %cst_15 : f32 to vector<2x8x8xf32>
    %47 = arith.select %45, %43, %46 : vector<2x8x8xi1>, vector<2x8x8xf32>
    %cst_16 = arith.constant dense<0xFF800000> : vector<2x8xf32>
    %48 = vector.multi_reduction <maximumf>, %47, %cst_16 [2] : vector<2x8x8xf32> to vector<2x8xf32>
    %49 = vector.shape_cast %48 : vector<2x8xf32> to vector<2x8x1xf32>
    %50 = vector.broadcast %49 : vector<2x8x1xf32> to vector<2x8x8xf32>
    %51 = arith.subf %47, %50 : vector<2x8x8xf32>
    %52 = math.exp %51 : vector<2x8x8xf32>
    %cst_17 = arith.constant dense<0.000000e+00> : vector<2x8xf32>
    %53 = vector.multi_reduction <add>, %52, %cst_17 [2] : vector<2x8x8xf32> to vector<2x8xf32>
    %54 = vector.shape_cast %53 : vector<2x8xf32> to vector<2x8x1xf32>
    %55 = tpu.reciprocal %54 : vector<2x8x1xf32> -> vector<2x8x1xf32>
    "tpu.trace_start"() <{level = 10 : i32, message = "bts,bsd->btd"}> : () -> ()
    %cst_18 = arith.constant dense<0.000000e+00> : vector<2x8x16xf32>
    %56 = tpu.matmul %52, %42, %cst_18 {dimension_numbers = #tpu.dot_dimension_numbers<[2], [1], [1], [2], [0, 0, 0, 1, 1, 2], [0], [0]>} : vector<2x8x8xf32>, vector<2x8x16xf32>, vector<2x8x16xf32> -> vector<2x8x16xf32>
    "tpu.trace_stop"() : () -> ()
    %57 = vector.broadcast %55 : vector<2x8x1xf32> to vector<2x8x16xf32>
    %58 = arith.mulf %56, %57 : vector<2x8x16xf32>
    %59 = vector.shape_cast %58 : vector<2x8x16xf32> to vector<16x16xf32>
    %60 = vector.extract_strided_slice %30 {offsets = [0, 16], sizes = [16, 16], strides = [1, 1]} : vector<16x64xf32> to vector<16x16xf32>
    %61 = vector.shape_cast %60 : vector<16x16xf32> to vector<2x8x16xf32>
    %62 = vector.extract_strided_slice %31 {offsets = [0, 16], sizes = [16, 16], strides = [1, 1]} : vector<16x64xf32> to vector<16x16xf32>
    %63 = vector.shape_cast %62 : vector<16x16xf32> to vector<2x8x16xf32>
    %64 = vector.extract_strided_slice %32 {offsets = [0, 16], sizes = [16, 16], strides = [1, 1]} : vector<16x64xf32> to vector<16x16xf32>
    %65 = vector.shape_cast %64 : vector<16x16xf32> to vector<2x8x16xf32>
    "tpu.trace_start"() <{level = 10 : i32, message = "btd,bsd->bts"}> : () -> ()
    %cst_19 = arith.constant dense<0.000000e+00> : vector<2x8x8xf32>
    %66 = tpu.matmul %61, %63, %cst_19 {dimension_numbers = #tpu.dot_dimension_numbers<[2], [2], [1], [1], [0, 0, 0, 1, 1, 1], [0], [0]>} : vector<2x8x16xf32>, vector<2x8x16xf32>, vector<2x8x8xf32> -> vector<2x8x8xf32>
    %cst_20 = arith.constant 0xFF800000 : f32
    "tpu.trace_stop"() : () -> ()
    %67 = vector.shape_cast %36 : vector<1x8x8xi1> to vector<1x8x8xi1>
    %68 = vector.broadcast %67 : vector<1x8x8xi1> to vector<2x8x8xi1>
    %69 = vector.broadcast %cst_20 : f32 to vector<2x8x8xf32>
    %70 = arith.select %68, %66, %69 : vector<2x8x8xi1>, vector<2x8x8xf32>
    %cst_21 = arith.constant dense<0xFF800000> : vector<2x8xf32>
    %71 = vector.multi_reduction <maximumf>, %70, %cst_21 [2] : vector<2x8x8xf32> to vector<2x8xf32>
    %72 = vector.shape_cast %71 : vector<2x8xf32> to vector<2x8x1xf32>
    %73 = vector.broadcast %72 : vector<2x8x1xf32> to vector<2x8x8xf32>
    %74 = arith.subf %70, %73 : vector<2x8x8xf32>
    %75 = math.exp %74 : vector<2x8x8xf32>
    %cst_22 = arith.constant dense<0.000000e+00> : vector<2x8xf32>
    %76 = vector.multi_reduction <add>, %75, %cst_22 [2] : vector<2x8x8xf32> to vector<2x8xf32>
    %77 = vector.shape_cast %76 : vector<2x8xf32> to vector<2x8x1xf32>
    %78 = tpu.reciprocal %77 : vector<2x8x1xf32> -> vector<2x8x1xf32>
    "tpu.trace_start"() <{level = 10 : i32, message = "bts,bsd->btd"}> : () -> ()
    %cst_23 = arith.constant dense<0.000000e+00> : vector<2x8x16xf32>
    %79 = tpu.matmul %75, %65, %cst_23 {dimension_numbers = #tpu.dot_dimension_numbers<[2], [1], [1], [2], [0, 0, 0, 1, 1, 2], [0], [0]>} : vector<2x8x8xf32>, vector<2x8x16xf32>, vector<2x8x16xf32> -> vector<2x8x16xf32>
    "tpu.trace_stop"() : () -> ()
    %80 = vector.broadcast %78 : vector<2x8x1xf32> to vector<2x8x16xf32>
    %81 = arith.mulf %79, %80 : vector<2x8x16xf32>
    %82 = vector.shape_cast %81 : vector<2x8x16xf32> to vector<16x16xf32>
    %83 = vector.extract_strided_slice %30 {offsets = [0, 32], sizes = [16, 16], strides = [1, 1]} : vector<16x64xf32> to vector<16x16xf32>
    %84 = vector.shape_cast %83 : vector<16x16xf32> to vector<2x8x16xf32>
    %85 = vector.extract_strided_slice %31 {offsets = [0, 32], sizes = [16, 16], strides = [1, 1]} : vector<16x64xf32> to vector<16x16xf32>
    %86 = vector.shape_cast %85 : vector<16x16xf32> to vector<2x8x16xf32>
    %87 = vector.extract_strided_slice %32 {offsets = [0, 32], sizes = [16, 16], strides = [1, 1]} : vector<16x64xf32> to vector<16x16xf32>
    %88 = vector.shape_cast %87 : vector<16x16xf32> to vector<2x8x16xf32>
    "tpu.trace_start"() <{level = 10 : i32, message = "btd,bsd->bts"}> : () -> ()
    %cst_24 = arith.constant dense<0.000000e+00> : vector<2x8x8xf32>
    %89 = tpu.matmul %84, %86, %cst_24 {dimension_numbers = #tpu.dot_dimension_numbers<[2], [2], [1], [1], [0, 0, 0, 1, 1, 1], [0], [0]>} : vector<2x8x16xf32>, vector<2x8x16xf32>, vector<2x8x8xf32> -> vector<2x8x8xf32>
    %cst_25 = arith.constant 0xFF800000 : f32
    "tpu.trace_stop"() : () -> ()
    %90 = vector.shape_cast %36 : vector<1x8x8xi1> to vector<1x8x8xi1>
    %91 = vector.broadcast %90 : vector<1x8x8xi1> to vector<2x8x8xi1>
    %92 = vector.broadcast %cst_25 : f32 to vector<2x8x8xf32>
    %93 = arith.select %91, %89, %92 : vector<2x8x8xi1>, vector<2x8x8xf32>
    %cst_26 = arith.constant dense<0xFF800000> : vector<2x8xf32>
    %94 = vector.multi_reduction <maximumf>, %93, %cst_26 [2] : vector<2x8x8xf32> to vector<2x8xf32>
    %95 = vector.shape_cast %94 : vector<2x8xf32> to vector<2x8x1xf32>
    %96 = vector.broadcast %95 : vector<2x8x1xf32> to vector<2x8x8xf32>
    %97 = arith.subf %93, %96 : vector<2x8x8xf32>
    %98 = math.exp %97 : vector<2x8x8xf32>
    %cst_27 = arith.constant dense<0.000000e+00> : vector<2x8xf32>
    %99 = vector.multi_reduction <add>, %98, %cst_27 [2] : vector<2x8x8xf32> to vector<2x8xf32>
    %100 = vector.shape_cast %99 : vector<2x8xf32> to vector<2x8x1xf32>
    %101 = tpu.reciprocal %100 : vector<2x8x1xf32> -> vector<2x8x1xf32>
    "tpu.trace_start"() <{level = 10 : i32, message = "bts,bsd->btd"}> : () -> ()
    %cst_28 = arith.constant dense<0.000000e+00> : vector<2x8x16xf32>
    %102 = tpu.matmul %98, %88, %cst_28 {dimension_numbers = #tpu.dot_dimension_numbers<[2], [1], [1], [2], [0, 0, 0, 1, 1, 2], [0], [0]>} : vector<2x8x8xf32>, vector<2x8x16xf32>, vector<2x8x16xf32> -> vector<2x8x16xf32>
    "tpu.trace_stop"() : () -> ()
    %103 = vector.broadcast %101 : vector<2x8x1xf32> to vector<2x8x16xf32>
    %104 = arith.mulf %102, %103 : vector<2x8x16xf32>
    %105 = vector.shape_cast %104 : vector<2x8x16xf32> to vector<16x16xf32>
    %106 = vector.extract_strided_slice %30 {offsets = [0, 48], sizes = [16, 16], strides = [1, 1]} : vector<16x64xf32> to vector<16x16xf32>
    %107 = vector.shape_cast %106 : vector<16x16xf32> to vector<2x8x16xf32>
    %108 = vector.extract_strided_slice %31 {offsets = [0, 48], sizes = [16, 16], strides = [1, 1]} : vector<16x64xf32> to vector<16x16xf32>
    %109 = vector.shape_cast %108 : vector<16x16xf32> to vector<2x8x16xf32>
    %110 = vector.extract_strided_slice %32 {offsets = [0, 48], sizes = [16, 16], strides = [1, 1]} : vector<16x64xf32> to vector<16x16xf32>
    %111 = vector.shape_cast %110 : vector<16x16xf32> to vector<2x8x16xf32>
    "tpu.trace_start"() <{level = 10 : i32, message = "btd,bsd->bts"}> : () -> ()
    %cst_29 = arith.constant dense<0.000000e+00> : vector<2x8x8xf32>
    %112 = tpu.matmul %107, %109, %cst_29 {dimension_numbers = #tpu.dot_dimension_numbers<[2], [2], [1], [1], [0, 0, 0, 1, 1, 1], [0], [0]>} : vector<2x8x16xf32>, vector<2x8x16xf32>, vector<2x8x8xf32> -> vector<2x8x8xf32>
    %cst_30 = arith.constant 0xFF800000 : f32
    "tpu.trace_stop"() : () -> ()
    %113 = vector.shape_cast %36 : vector<1x8x8xi1> to vector<1x8x8xi1>
    %114 = vector.broadcast %113 : vector<1x8x8xi1> to vector<2x8x8xi1>
    %115 = vector.broadcast %cst_30 : f32 to vector<2x8x8xf32>
    %116 = arith.select %114, %112, %115 : vector<2x8x8xi1>, vector<2x8x8xf32>
    %cst_31 = arith.constant dense<0xFF800000> : vector<2x8xf32>
    %117 = vector.multi_reduction <maximumf>, %116, %cst_31 [2] : vector<2x8x8xf32> to vector<2x8xf32>
    %118 = vector.shape_cast %117 : vector<2x8xf32> to vector<2x8x1xf32>
    %119 = vector.broadcast %118 : vector<2x8x1xf32> to vector<2x8x8xf32>
    %120 = arith.subf %116, %119 : vector<2x8x8xf32>
    %121 = math.exp %120 : vector<2x8x8xf32>
    %cst_32 = arith.constant dense<0.000000e+00> : vector<2x8xf32>
    %122 = vector.multi_reduction <add>, %121, %cst_32 [2] : vector<2x8x8xf32> to vector<2x8xf32>
    %123 = vector.shape_cast %122 : vector<2x8xf32> to vector<2x8x1xf32>
    %124 = tpu.reciprocal %123 : vector<2x8x1xf32> -> vector<2x8x1xf32>
    "tpu.trace_start"() <{level = 10 : i32, message = "bts,bsd->btd"}> : () -> ()
    %cst_33 = arith.constant dense<0.000000e+00> : vector<2x8x16xf32>
    %125 = tpu.matmul %121, %111, %cst_33 {dimension_numbers = #tpu.dot_dimension_numbers<[2], [1], [1], [2], [0, 0, 0, 1, 1, 2], [0], [0]>} : vector<2x8x8xf32>, vector<2x8x16xf32>, vector<2x8x16xf32> -> vector<2x8x16xf32>
    "tpu.trace_stop"() : () -> ()
    %126 = vector.broadcast %124 : vector<2x8x1xf32> to vector<2x8x16xf32>
    %127 = arith.mulf %125, %126 : vector<2x8x16xf32>
    %128 = vector.shape_cast %127 : vector<2x8x16xf32> to vector<16x16xf32>
    %129 = tpu.concatenate %59, %82, %105, %128 in 1 : vector<16x16xf32>, vector<16x16xf32>, vector<16x16xf32>, vector<16x16xf32> -> vector<16x64xf32>
    %c0_34 = arith.constant 0 : index
    %c0_35 = arith.constant 0 : index
    %130 = vector.load %arg3[%c0_34, %c0_35] : memref<64x64xf32, #tpu.memory_space<vmem>>, vector<64x64xf32>
    %cst_36 = arith.constant dense<0.000000e+00> : vector<16x64xf32>
    %131 = tpu.matmul %129, %130, %cst_36 {dimension_numbers = #tpu.dot_dimension_numbers<[1], [0], [0], [1], [0, 0, 1, 1], [], []>} : vector<16x64xf32>, vector<64x64xf32>, vector<16x64xf32> -> vector<16x64xf32>
    %c0_37 = arith.constant 0 : index
    %c0_38 = arith.constant 0 : index
    %132 = vector.load %arg4[%c0_37, %c0_38] : memref<1x64xf32, #tpu.memory_space<vmem>>, vector<1x64xf32>
    %133 = vector.broadcast %132 : vector<1x64xf32> to vector<16x64xf32>
    %134 = arith.addf %131, %133 : vector<16x64xf32>
    %135 = arith.addf %1, %134 : vector<16x64xf32>
    %cst_39 = arith.constant dense<0.000000e+00> : vector<16xf32>
    %136 = vector.multi_reduction <add>, %135, %cst_39 [1] : vector<16x64xf32> to vector<16xf32>
    %137 = vector.shape_cast %136 : vector<16xf32> to vector<16x1xf32>
    %cst_40 = arith.constant 6.400000e+01 : f32
    %138 = vector.broadcast %cst_40 : f32 to vector<16x1xf32>
    %139 = arith.divf %137, %138 : vector<16x1xf32>
    %140 = vector.broadcast %139 : vector<16x1xf32> to vector<16x64xf32>
    %141 = arith.subf %135, %140 : vector<16x64xf32>
    %142 = arith.mulf %141, %141 : vector<16x64xf32>
    %cst_41 = arith.constant dense<0.000000e+00> : vector<16xf32>
    %143 = vector.multi_reduction <add>, %142, %cst_41 [1] : vector<16x64xf32> to vector<16xf32>
    %144 = vector.shape_cast %143 : vector<16xf32> to vector<16x1xf32>
    %cst_42 = arith.constant 6.400000e+01 : f32
    %145 = vector.broadcast %cst_42 : f32 to vector<16x1xf32>
    %146 = arith.divf %144, %145 : vector<16x1xf32>
    %147 = vector.broadcast %139 : vector<16x1xf32> to vector<16x64xf32>
    %148 = arith.subf %135, %147 : vector<16x64xf32>
    %cst_43 = arith.constant 9.99999974E-6 : f32
    %149 = vector.broadcast %cst_43 : f32 to vector<16x1xf32>
    %150 = arith.addf %146, %149 : vector<16x1xf32>
    %151 = math.rsqrt %150 : vector<16x1xf32>
    %152 = vector.broadcast %151 : vector<16x1xf32> to vector<16x64xf32>
    %153 = arith.mulf %148, %152 : vector<16x64xf32>
    %c0_44 = arith.constant 0 : index
    %c0_45 = arith.constant 0 : index
    %154 = vector.load %arg11[%c0_44, %c0_45] : memref<1x64xf32, #tpu.memory_space<vmem>>, vector<1x64xf32>
    %155 = vector.broadcast %154 : vector<1x64xf32> to vector<16x64xf32>
    %156 = arith.mulf %153, %155 : vector<16x64xf32>
    %c0_46 = arith.constant 0 : index
    %c0_47 = arith.constant 0 : index
    %157 = vector.load %arg12[%c0_46, %c0_47] : memref<1x64xf32, #tpu.memory_space<vmem>>, vector<1x64xf32>
    %158 = vector.broadcast %157 : vector<1x64xf32> to vector<16x64xf32>
    %159 = arith.addf %156, %158 : vector<16x64xf32>
    %c0_48 = arith.constant 0 : index
    %c0_49 = arith.constant 0 : index
    %160 = vector.load %arg5[%c0_48, %c0_49] : memref<64x256xf32, #tpu.memory_space<vmem>>, vector<64x256xf32>
    %cst_50 = arith.constant dense<0.000000e+00> : vector<16x256xf32>
    %161 = tpu.matmul %159, %160, %cst_50 {dimension_numbers = #tpu.dot_dimension_numbers<[1], [0], [0], [1], [0, 0, 1, 1], [], []>} : vector<16x64xf32>, vector<64x256xf32>, vector<16x256xf32> -> vector<16x256xf32>
    %c0_51 = arith.constant 0 : index
    %c0_52 = arith.constant 0 : index
    %162 = vector.load %arg6[%c0_51, %c0_52] : memref<1x256xf32, #tpu.memory_space<vmem>>, vector<1x256xf32>
    %163 = vector.broadcast %162 : vector<1x256xf32> to vector<16x256xf32>
    %164 = arith.addf %161, %163 : vector<16x256xf32>
    %cst_53 = arith.constant 0.000000e+00 : f32
    %165 = vector.broadcast %cst_53 : f32 to vector<16x256xf32>
    %166 = arith.maximumf %164, %165 : vector<16x256xf32>
    %c0_54 = arith.constant 0 : index
    %c0_55 = arith.constant 0 : index
    %167 = vector.load %arg7[%c0_54, %c0_55] : memref<256x64xf32, #tpu.memory_space<vmem>>, vector<256x64xf32>
    %cst_56 = arith.constant dense<0.000000e+00> : vector<16x64xf32>
    %168 = tpu.matmul %166, %167, %cst_56 {dimension_numbers = #tpu.dot_dimension_numbers<[1], [0], [0], [1], [0, 0, 1, 1], [], []>} : vector<16x256xf32>, vector<256x64xf32>, vector<16x64xf32> -> vector<16x64xf32>
    %c0_57 = arith.constant 0 : index
    %c0_58 = arith.constant 0 : index
    %169 = vector.load %arg8[%c0_57, %c0_58] : memref<1x64xf32, #tpu.memory_space<vmem>>, vector<1x64xf32>
    %170 = vector.broadcast %169 : vector<1x64xf32> to vector<16x64xf32>
    %171 = arith.addf %168, %170 : vector<16x64xf32>
    %172 = arith.addf %135, %171 : vector<16x64xf32>
    %173 = vector.shape_cast %172 : vector<16x64xf32> to vector<2x8x64xf32>
    %c0_59 = arith.constant 0 : index
    %c0_60 = arith.constant 0 : index
    %c0_61 = arith.constant 0 : index
    %174 = vector.load %arg13[%c0_59, %c0_60, %c0_61] : memref<2x8x64xf32, #tpu.memory_space<vmem>>, vector<2x8x64xf32>
    tpu.vector_store %arg13[%c0_59, %c0_60, %c0_61], %173 {strides = array<i32>} : memref<2x8x64xf32, #tpu.memory_space<vmem>>, vector<2x8x64xf32>,
    return
  }
  func.func @transform_0(%arg0: i32) -> (i32, i32, i32) {
    %c0_i32 = arith.constant 0 : i32
    %c0_i32_0 = arith.constant 0 : i32
    %c0_i32_1 = arith.constant 0 : i32
    return %arg0, %c0_i32, %c0_i32_0 : i32, i32, i32
  }
  func.func @transform_1(%arg0: i32) -> (i32, i32) {
    %c0_i32 = arith.constant 0 : i32
    %c0_i32_0 = arith.constant 0 : i32
    %c0_i32_1 = arith.constant 0 : i32
    return %c0_i32, %c0_i32_0 : i32, i32
  }
  func.func @transform_2(%arg0: i32) -> (i32, i32) {
    %c0_i32 = arith.constant 0 : i32
    %c0_i32_0 = arith.constant 0 : i32
    %c0_i32_1 = arith.constant 0 : i32
    return %c0_i32, %c0_i32_0 : i32, i32
  }
  func.func @transform_3(%arg0: i32) -> (i32, i32) {
    %c0_i32 = arith.constant 0 : i32
    %c0_i32_0 = arith.constant 0 : i32
    %c0_i32_1 = arith.constant 0 : i32
    return %c0_i32, %c0_i32_0 : i32, i32
  }
  func.func @transform_4(%arg0: i32) -> (i32, i32) {
    %c0_i32 = arith.constant 0 : i32
    %c0_i32_0 = arith.constant 0 : i32
    %c0_i32_1 = arith.constant 0 : i32
    return %c0_i32, %c0_i32_0 : i32, i32
  }
  func.func @transform_5(%arg0: i32) -> (i32, i32) {
    %c0_i32 = arith.constant 0 : i32
    %c0_i32_0 = arith.constant 0 : i32
    %c0_i32_1 = arith.constant 0 : i32
    return %c0_i32, %c0_i32_0 : i32, i32
  }
  func.func @transform_6(%arg0: i32) -> (i32, i32) {
    %c0_i32 = arith.constant 0 : i32
    %c0_i32_0 = arith.constant 0 : i32
    %c0_i32_1 = arith.constant 0 : i32
    return %c0_i32, %c0_i32_0 : i32, i32
  }
  func.func @transform_7(%arg0: i32) -> (i32, i32) {
    %c0_i32 = arith.constant 0 : i32
    %c0_i32_0 = arith.constant 0 : i32
    %c0_i32_1 = arith.constant 0 : i32
    return %c0_i32, %c0_i32_0 : i32, i32
  }
  func.func @transform_8(%arg0: i32) -> (i32, i32) {
    %c0_i32 = arith.constant 0 : i32
    %c0_i32_0 = arith.constant 0 : i32
    %c0_i32_1 = arith.constant 0 : i32
    return %c0_i32, %c0_i32_0 : i32, i32
  }
  func.func @transform_9(%arg0: i32) -> (i32, i32) {
    %c0_i32 = arith.constant 0 : i32
    %c0_i32_0 = arith.constant 0 : i32
    %c0_i32_1 = arith.constant 0 : i32
    return %c0_i32, %c0_i32_0 : i32, i32
  }
  func.func @transform_10(%arg0: i32) -> (i32, i32) {
    %c0_i32 = arith.constant 0 : i32
    %c0_i32_0 = arith.constant 0 : i32
    %c0_i32_1 = arith.constant 0 : i32
    return %c0_i32, %c0_i32_0 : i32, i32
  }
  func.func @transform_11(%arg0: i32) -> (i32, i32) {
    %c0_i32 = arith.constant 0 : i32
    %c0_i32_0 = arith.constant 0 : i32
    %c0_i32_1 = arith.constant 0 : i32
    return %c0_i32, %c0_i32_0 : i32, i32
  }
  func.func @transform_12(%arg0: i32) -> (i32, i32, i32) {
    %c0_i32 = arith.constant 0 : i32
    %c0_i32_0 = arith.constant 0 : i32
    %c0_i32_1 = arith.constant 0 : i32
    return %arg0, %c0_i32, %c0_i32_0 : i32, i32, i32
  }
}

</mosaic_0001>

<bundles_post_ra>
// kernel: block_forward.1
= control target key start
LH: loop header
LB: loop body
LE: loop exit
PB: predicated region body
PF: predicated region fallthrough
CT: control target
= control target key end

     0   :  { %vm44_vm0 = vcmask 523264   ;;  %s2904_s0 = inlined_call_operand.vmem [shape: f32[2,8,64], index: 0, kind: input, shape index: {}]   ;;  %s2905_s1 = inlined_call_operand.vmem [shape: f32[64,192], index: 1, kind: input, shape index: {}]   ;;  %s2906_s2 = inlined_call_operand.vmem [shape: f32[64,64], index: 2, kind: input, shape index: {}]   ;;  %s2907_s3 = inlined_call_operand.vmem [shape: f32[1,64], index: 3, kind: input, shape index: {}]   ;;  %s2908_s4 = inlined_call_operand.vmem [shape: f32[64,256], index: 4, kind: input, shape index: {}]   ;;  %s2909_s5 = inlined_call_operand.vmem [shape: f32[1,256], index: 5, kind: input, shape index: {}]   ;;  %s2910_s6 = inlined_call_operand.vmem [shape: f32[256,64], index: 6, kind: input, shape index: {}]   ;;  %s2911_s7 = inlined_call_operand.vmem [shape: f32[1,64], index: 7, kind: input, shape index: {}]   ;;  %s2912_s8 = inlined_call_operand.vmem [shape: f32[1,64], index: 8, kind: input, shape index: {}]   ;;  %s2913_s9 = inlined_call_operand.vmem [shape: f32[1,64], index: 9, kind: input, shape index: {}]   ;;  %s2914_s10 = inlined_call_operand.vmem [shape: f32[1,64], index: 10, kind: input, shape index: {}]   ;;  %s2915_s11 = inlined_call_operand.vmem [shape: f32[1,64], index: 11, kind: input, shape index: {}]   ;;  %s2916_s12 = inlined_call_operand.hbm [shape: f32[2,8,64], index: 12, kind: output, shape index: {}]  }
   0x1   :  { %v2398_v0 = vld [vmem:[%s2904_s0] sm:$0xff]  ;;  %v2403_v1 = vld [vmem:[%s2904_s0 + $0x8] sm:$0xff] }
   0x2   :  { %17 = vsyncpa [#allocation3], 0  ;;  %v45_v2 = vsel %vm44_vm0, %v2398_v0, 0.0  ;;  %v48_v3 = vsel %vm44_vm0, %v2403_v1, 0.0  ;;  %v91_v14 = vld [vmem:[%s2905_s1 + $0x8] sm:$0xff]  ;;  %v93_v15 = vld [vmem:[%s2905_s1 + $0x18] sm:$0xff]  ;;  %v191_v63 = vlaneseq }
   0x3   :  { %46 = vadd.xlane.f32.xlu0 %v45_v2  ;;  %v2162_v16 = vpack.c.bf16 %v93_v15, %v91_v14  ;;  %v90_v17 = vld [vmem:[%s2905_s1] sm:$0xff]  ;;  %v92_v18 = vld [vmem:[%s2905_s1 + $0x10] sm:$0xff]  ;;  %v95_v20 = vld [vmem:[%s2905_s1 + $0x28] sm:$0xff]  ;;  %v2318_v33 = vmov 0.0   ;;  %vm2319_vm1 = vmmov 0   ;;  %vm199_vm2 = vcmask 130048  }
   0x4   :  { %v2164_v19 = vpack.c.bf16 %v92_v18, %v90_v17  ;;  %v97_v21 = vld [vmem:[%s2905_s1 + $0x38] sm:$0xff]  ;;  %v94_v23 = vld [vmem:[%s2905_s1 + $0x20] sm:$0xff]  ;;  %v96_v24 = vld [vmem:[%s2905_s1 + $0x30] sm:$0xff]  ;;  %176 = vmatprep.mubr.f32.mxu0 %v2318_v33  ;;  %2063 = vmatprep.subr.mxu1 %v2318_v33  ;;  %v2507_v2 = vshrl.u32 %v191_v63, 7  ;;  %vm357_vm4 = vcmask 64512   ;;  %s2322_s22 = smov 112  }
   0x5   :  { %2163 = vmatprep.subr.bf16.mxu0 %v2162_v16  ;;  %v2166_v22 = vpack.c.bf16 %v97_v21, %v95_v20  ;;  %v2168_v25 = vpack.c.bf16 %v96_v24, %v94_v23  ;;  %v99_v26 = vld [vmem:[%s2905_s1 + $0x48] sm:$0xff]  ;;  %v101_v27 = vld [vmem:[%s2905_s1 + $0x58] sm:$0xff]  ;;  %v98_v28 = vld [vmem:[%s2905_s1 + $0x40] sm:$0xff]  ;;  %2065 = vmatprep.mubr.msk.f32.mxu1 %vm2319_vm1, %v2318_v33  ;;  %s2323_s23 = smov 32   ;;  %s2324_s24 = smov 96   ;;  %vm1550_vm5 = vcmask 261120  }
   0x6   :  { %2165 = vmatpush1.bf16.msra.mxu0 %v2164_v19  ;;  %v2170_v29 = vpack.c.bf16 %v101_v27, %v99_v26  ;;  %v100_v30 = vld [vmem:[%s2905_s1 + $0x50] sm:$0xff]  ;;  %v103_v31 = vld [vmem:[%s2905_s1 + $0x68] sm:$0xff]  ;;  %v105_v32 = vld [vmem:[%s2905_s1 + $0x78] sm:$0xff]  ;;  %s2325_s0 = smov 16   ;;  %s2326_s25 = smov 80   ;;  %vm1553_vm6 = vcmask 392192  }
   0x7   :  { %49 = vadd.xlane.f32.xlu0 %v48_v3  ;;  %2167 = vmatprep.subr.bf16.mxu0 %v2166_v22  ;;  %v2172_v34 = vpack.c.bf16 %v100_v30, %v98_v28  ;;  %v2174_v35 = vpack.c.bf16 %v105_v32, %v103_v31  ;;  %v102_v36 = vld [vmem:[%s2905_s1 + $0x60] sm:$0xff]  ;;  %v104_v37 = vld [vmem:[%s2905_s1 + $0x70] sm:$0xff]  ;;  %v194_v3 = vand.u32 127, %v191_v63 }
   0x8   :  { %v2176_v38 = vpack.c.bf16 %v104_v37, %v102_v36  ;;  %v1947_v46 = vld [vmem:[%s2912_s8] ss:$0 sm:$0xff]  ;;  %s2320_s8 = smov 64  }
   0x9   :  { %v1948_v48 = vld [vmem:[%s2913_s9] ss:$0 sm:$0xff]  ;;  %vm2510_vm3 = vcmp.le.s32.totalorder %v194_v3, %v2507_v2  ;;  %s2321_s9 = smov 48  }
   0xa   :  { %2169 = vmatpush1.bf16.msra.mxu0 %v2168_v25 }
   0xb   :  { %2171 = vmatprep.subr.bf16.mxu0 %v2170_v29 }
   0xe   :  { %2173 = vmatpush1.bf16.msra.mxu0 %v2172_v34 }
   0xf   :  { %2175 = vmatprep.subr.bf16.mxu0 %v2174_v35 }
  0x12   :  { %2177 = vmatpush1.bf16.msra.mxu0 %v2176_v38 }
  0x13   :  { %2088 = vmatprep.subr.mxu0 %v2318_v33 }
  0x90   :  { %v47_v4 = vpop.xlane.xlu0 %46 }
  0x91   :  { %v52_v5 = vmul.f32 0.015625, %v47_v4 }
  0x93   :  { %v54_v6 = vsub.f32 %v2398_v0, %v52_v5 }
  0x94   :  { %v50_v7 = vpop.xlane.xlu0 %49 }
  0x95   :  { %v53_v8 = vmul.f32 0.015625, %v50_v7  ;;  %v56_v9 = vmul.f32 %v54_v6, %v54_v6 }
  0x97   :  { %v55_v10 = vsub.f32 %v2403_v1, %v53_v8  ;;  %v58_v11 = vsel %vm44_vm0, %v56_v9, 0.0 }
  0x98   :  { %59 = vadd.xlane.f32.xlu1 %v58_v11 }
  0x99   :  { %v57_v12 = vmul.f32 %v55_v10, %v55_v10 }
  0x9b   :  { %v61_v13 = vsel %vm44_vm0, %v57_v12, 0.0 }
  0x9c   :  { %62 = vadd.xlane.f32.xlu1 %v61_v13 }
 0x125   :  { %v60_v39 = vpop.xlane.xlu1 %59 }
 0x126   :  { %v64_v40 = vmul.f32 0.015625, %v60_v39 }
 0x128   :  { %v66_v41 = vadd.f32 1e-05, %v64_v40 }
 0x129   :  { %v63_v42 = vpop.xlane.xlu1 %62 }
 0x12a   :  { %2254 = vrsqrt.f32 %v66_v41  ;;  %v65_v43 = vmul.f32 0.015625, %v63_v42 }
 0x12c   :  { %v67_v44 = vadd.f32 1e-05, %v65_v43 }
 0x12e   :  { %2256 = vrsqrt.f32 %v67_v44 }
 0x134   :  { %v2255_v45 = vpop.eup %2254 }
 0x135   :  { %v70_v47 = vmul.f32 %v2255_v45, %v54_v6 }
 0x137   :  { %v79_v49 = vmul.f32 %v1947_v46, %v70_v47 }
 0x138   :  { %v2257_v50 = vpop.eup %2256 }
 0x139   :  { %v88_v51 = vadd.f32 %v1948_v48, %v79_v49  ;;  %v71_v52 = vmul.f32 %v2257_v50, %v55_v10 }
 0x13b   :  { %1949 = vmatmul.mubr.msk.f32.vlgmr.msra.gmra.mrb[0].mxu0 %vm44_vm0, %v88_v51  ;;  %v80_v53 = vmul.f32 %v1947_v46, %v71_v52 }
 0x13c   :  { %182 = vmatprep.mubr.f32.mxu0 %v2318_v33 }
 0x13d   :  { %v89_v54 = vadd.f32 %v1948_v48, %v80_v53 }
 0x13f   :  { %1950 = vmatmul.mubr.msk.f32.gmra.mrb[2].mxu0 %vm44_vm0, %v89_v54 }
 0x140   :  { %2090 = vmatprep.mubr.msk.f32.mxu0 %vm2319_vm1, %v2318_v33 }
 0x20e   :  { %v2477_v55 = vpop.f32.mrb[0].mxu0 }
 0x20f   :  { %197 = vrot.lane.b32.xlu0 %v2477_v55, %s2320_s8  ;;  %v2480_v56 = vpop.f32.mrb[1].mxu0  ;;  %v2489_v60 = vmul.f32 0.125, %v2477_v55 }
 0x212   :  { %v2482_v57 = vpop.f32.mrb[2].mxu0 }
 0x213   :  { %276 = vrot.lane.b32.xlu1 %v2482_v57, %s2320_s8  ;;  %v2485_v58 = vpop.f32.mrb[3].mxu0  ;;  %v2498_v62 = vmul.f32 0.125, %v2482_v57 }
 0x281   :  { %v198_v59 = vpop.permute.xlu0 %197 }
 0x282   :  { %2064 = vmatpush3.xpose.msk.msra.mxu1 %vm199_vm2, %v198_v59 }
 0x283   :  { %2068 = vmatprep.subr.mxu1 %v2318_v33 }
 0x285   :  { %v277_v61 = vpop.permute.xlu1 %276  ;;  %2066 = vmatmul.mubr.msk.f32.vlgmr.msra.gmra.mrb[0].mxu1 %vm199_vm2, %v2489_v60 }
 0x286   :  { %2069 = vmatpush3.xpose.msk.msra.mxu1 %vm199_vm2, %v277_v61  ;;  %2070 = vmatprep.mubr.msk.f32.mxu1 %vm2319_vm1, %v2318_v33 }
 0x287   :  { %2073 = vmatprep.subr.mxu1 %v2318_v33 }
 0x289   :  { %2071 = vmatmul.mubr.msk.f32.vlgmr.msra.gmra.mrb[2].mxu1 %vm199_vm2, %v2498_v62 }
 0x28a   :  { %2074 = vmatpush3.msra.mxu1 %v2480_v56  ;;  %2075 = vmatprep.mubr.msk.f32.mxu1 %vm2319_vm1, %v2318_v33 }
 0x28b   :  { %2078 = vmatprep.subr.mxu1 %v2318_v33 }
 0x358   :  { %v271_v5 = vpop.f32.mrb[0].mxu1 }
 0x359   :  { %v355_v6 = vsel %vm2510_vm3, %v271_v5, -inf  ;;  %v2067_v7 = vpop.f32.mrb[1].mxu1 }
 0x35a   :  { %v358_v8 = vsel %vm357_vm4, %v355_v6, -inf }
 0x35b   :  { %359 = vmax.xlane.f32.xlu1 %v358_v8 }
 0x35c   :  { %v349_v9 = vpop.f32.mrb[2].mxu1 }
 0x35d   :  { %v356_v10 = vsel %vm2510_vm3, %v349_v9, -inf  ;;  %v2072_v11 = vpop.f32.mrb[3].mxu1 }
 0x35e   :  { %v361_v12 = vsel %vm357_vm4, %v356_v10, -inf }
 0x35f   :  { %362 = vmax.xlane.f32.xlu0 %v361_v12 }
 0x36c   :  { %606 = vrot.lane.b32.xlu1 %v2482_v57, %s2321_s9 }
 0x370   :  { %526 = vrot.lane.b32.xlu1 %v2489_v60, %s2322_s22 }
 0x374   :  { %604 = vrot.lane.b32.xlu1 %v2498_v62, %s2322_s22 }
 0x375   :  { %528 = vrot.lane.b32.xlu0 %v2477_v55, %s2321_s9 }
 0x378   :  { %782 = vrot.lane.b32.xlu1 %v2485_v58, %s2322_s22 }
 0x379   :  { %705 = vrot.lane.b32.xlu0 %v2480_v56, %s2322_s22  ;;  %s2327_s22 = smov [#allocation2]  }
 0x3e8   :  { %v360_v13 = vpop.xlane.xlu1 %359 }
 0x3e9   :  { %v364_v14 = vsub.f32 %v355_v6, %v360_v13 }
 0x3eb   :  { %v366_v15 = vmul.f32 1.442695, %v364_v14 }
 0x3ec   :  { %v607_v16 = vpop.permute.xlu1 %606  ;;  %v363_v17 = vpop.xlane.xlu0 %362 }
 0x3ed   :  { %2258 = vpow2.f32 %v366_v15  ;;  %v365_v18 = vsub.f32 %v356_v10, %v363_v17  ;;  %2089 = vmatpush3.xpose.msk.msra.mxu0 %vm199_vm2, %v607_v16 }
 0x3ee   :  { %2098 = vmatprep.subr.mxu0 %v2318_v33 }
 0x3ef   :  { %v368_v19 = vmul.f32 1.442695, %v365_v18 }
 0x3f0   :  { %v527_v20 = vpop.permute.xlu1 %526  ;;  %v529_v25 = vpop.permute.xlu0 %528 }
 0x3f1   :  { %2260 = vpow2.f32 %v368_v19 }
 0x3f4   :  { %v605_v21 = vpop.permute.xlu1 %604  ;;  %v706_v26 = vpop.permute.xlu0 %705 }
 0x3f5   :  { %2091 = vmatmul.mubr.msk.f32.vlgmr.msra.gmra.mrb[4].mxu0 %vm199_vm2, %v605_v21 }
 0x3f6   :  { %2100 = vmatprep.mubr.msk.f32.mxu0 %vm2319_vm1, %v2318_v33 }
 0x3f7   :  { %v2533_v22 = vpop.eup %2258 }
 0x3f8   :  { %2076 = vmatmul.mubr.msk.f32.vlgmr.msra.gmra.mrb[4].mxu1 %vm357_vm4, %v2533_v22  ;;  %v783_v23 = vpop.permute.xlu1 %782 }
 0x3f9   :  { %2079 = vmatpush3.msra.mxu1 %v2485_v58  ;;  %2099 = vmatpush3.msra.mxu0 %v783_v23 }
 0x3fa   :  { %2080 = vmatprep.mubr.msk.f32.mxu1 %vm2319_vm1, %v2318_v33  ;;  %2083 = vmatprep.subr.mxu1 %v2318_v33 }
 0x3fb   :  { %v2541_v24 = vpop.eup %2260  ;;  %2108 = vmatprep.subr.mxu0 %v2318_v33 }
 0x3fc   :  { %2081 = vmatmul.mubr.msk.f32.vlgmr.msra.gmra.mrb[6].mxu1 %vm357_vm4, %v2541_v24 }
 0x3fd   :  { %2085 = vmatprep.mubr.msk.f32.mxu1 %vm2319_vm1, %v2318_v33 }
 0x400   :  { %2084 = vmatpush3.xpose.msk.msra.mxu1 %vm199_vm2, %v529_v25 }
 0x401   :  { %2093 = vmatprep.subr.mxu1 %v2318_v33 }
 0x403   :  { %2086 = vmatmul.mubr.msk.f32.vlgmr.msra.gmra.mrb[8].mxu1 %vm199_vm2, %v527_v20 }
 0x404   :  { %2094 = vmatpush3.msra.mxu1 %v706_v26  ;;  %2095 = vmatprep.mubr.msk.f32.mxu1 %vm2319_vm1, %v2318_v33 }
 0x405   :  { %2103 = vmatprep.subr.mxu1 %v2318_v33 }
 0x4c8   :  { %v678_v27 = vpop.f32.mrb[4].mxu0 }
 0x4c9   :  { %v683_v28 = vsel %vm2510_vm3, %v678_v27, -inf  ;;  %v2092_v29 = vpop.f32.mrb[5].mxu0 }
 0x4ca   :  { %v687_v30 = vsel %vm357_vm4, %v683_v28, -inf }
 0x4cb   :  { %688 = vmax.xlane.f32.xlu1 %v687_v30  ;;  %v2557_v31 = vpop.f32.mrb[4].mxu1 }
 0x4cc   :  { %v2077_v32 = vpop.f32.mrb[5].mxu1 }
 0x4cf   :  { %v2559_v34 = vpop.f32.mrb[6].mxu1 }
 0x4d0   :  { %v2082_v35 = vpop.f32.mrb[7].mxu1 }
 0x4d6   :  { %v600_v36 = vpop.f32.mrb[8].mxu1 }
 0x4d7   :  { %v682_v37 = vsel %vm2510_vm3, %v600_v36, -inf  ;;  %v2087_v38 = vpop.f32.mrb[9].mxu1 }
 0x4d8   :  { %v684_v39 = vsel %vm357_vm4, %v682_v37, -inf }
 0x4d9   :  { %685 = vmax.xlane.f32.xlu0 %v684_v39 }
 0x4dc   :  { %940 = vrot.lane.b32.xlu1 %v2482_v57, %s2323_s23 }
 0x4e0   :  { %938 = vrot.lane.b32.xlu1 %v2498_v62, %s2324_s24 }
 0x4ef   :  { %862 = vrot.lane.b32.xlu0 %v2477_v55, %s2323_s23 }
 0x4f3   :  { %860 = vrot.lane.b32.xlu0 %v2489_v60, %s2324_s24 }
 0x4f7   :  { %1038 = vrot.lane.b32.xlu0 %v2480_v56, %s2324_s24 }
 0x558   :  { %v689_v40 = vpop.xlane.xlu1 %688 }
 0x559   :  { %v691_v41 = vsub.f32 %v683_v28, %v689_v40 }
 0x55b   :  { %v694_v42 = vmul.f32 1.442695, %v691_v41 }
 0x55c   :  { %v941_v43 = vpop.permute.xlu1 %940 }
 0x55d   :  { %2262 = vpow2.f32 %v694_v42 }
 0x560   :  { %v939_v48 = vpop.permute.xlu1 %938 }
 0x566   :  { %v686_v44 = vpop.xlane.xlu0 %685 }
 0x567   :  { %v2574_v45 = vpop.eup %2262  ;;  %v690_v46 = vsub.f32 %v682_v37, %v686_v44 }
 0x568   :  { %2101 = vmatmul.mubr.msk.f32.vlgmr.msra.gmra.mrb[6].mxu0 %vm357_vm4, %v2574_v45  ;;  %v699_v37 = vsel %vm357_vm4, %v2574_v45, 0.0 }
 0x569   :  { %v692_v47 = vmul.f32 1.442695, %v690_v46  ;;  %2109 = vmatpush3.xpose.msk.msra.mxu0 %vm199_vm2, %v941_v43  ;;  %2110 = vmatprep.mubr.msk.f32.mxu0 %vm2319_vm1, %v2318_v33 }
 0x56a   :  { %2118 = vmatprep.subr.mxu0 %v2318_v33  ;;  %v863_v49 = vpop.permute.xlu0 %862 }
 0x56b   :  { %2264 = vpow2.f32 %v692_v47 }
 0x56c   :  { %2111 = vmatmul.mubr.msk.f32.vlgmr.msra.gmra.mrb[8].mxu0 %vm199_vm2, %v939_v48  ;;  %v373_v48 = vsel %vm357_vm4, %v2541_v24, 0.0 }
 0x56d   :  { %2120 = vmatprep.mubr.msk.f32.mxu0 %vm2319_vm1, %v2318_v33 }
 0x56e   :  { %v861_v50 = vpop.permute.xlu0 %860 }
 0x572   :  { %v1039_v52 = vpop.permute.xlu0 %1038 }
 0x575   :  { %v2585_v51 = vpop.eup %2264 }
 0x576   :  { %2096 = vmatmul.mubr.msk.f32.vlgmr.msra.gmra.mrb[10].mxu1 %vm357_vm4, %v2585_v51  ;;  %v696_v38 = vsel %vm357_vm4, %v2585_v51, 0.0  ;;  %v370_v51 = vsel %vm357_vm4, %v2533_v22, 0.0 }
 0x577   :  { %2104 = vmatpush3.xpose.msk.msra.mxu1 %vm199_vm2, %v863_v49  ;;  %2105 = vmatprep.mubr.msk.f32.mxu1 %vm2319_vm1, %v2318_v33 }
 0x578   :  { %2113 = vmatprep.subr.mxu1 %v2318_v33 }
 0x57a   :  { %2106 = vmatmul.mubr.msk.f32.vlgmr.msra.gmra.mrb[12].mxu1 %vm199_vm2, %v861_v50 }
 0x57b   :  { %2114 = vmatpush3.msra.mxu1 %v1039_v52  ;;  %2115 = vmatprep.mubr.msk.f32.mxu1 %vm2319_vm1, %v2318_v33 }
 0x57c   :  { %2123 = vmatprep.subr.mxu1 %v2318_v33 }
 0x63b   :  { %v2597_v53 = vpop.f32.mrb[6].mxu0 }
 0x63c   :  { %v2102_v54 = vpop.f32.mrb[7].mxu0 }
 0x63f   :  { %v1012_v59 = vpop.f32.mrb[8].mxu0 }
 0x640   :  { %v1017_v61 = vsel %vm2510_vm3, %v1012_v59, -inf  ;;  %v2112_v63 = vpop.f32.mrb[9].mxu0 }
 0x641   :  { %v1021_v3 = vsel %vm357_vm4, %v1017_v61, -inf }
 0x642   :  { %1022 = vmax.xlane.f32.xlu1 %v1021_v3 }
 0x649   :  { %v2602_v5 = vpop.f32.mrb[10].mxu1 }
 0x64a   :  { %v2097_v6 = vpop.f32.mrb[11].mxu1 }
 0x64d   :  { %v934_v7 = vpop.f32.mrb[12].mxu1 }
 0x64e   :  { %v1016_v8 = vsel %vm2510_vm3, %v934_v7, -inf  ;;  %v2107_v9 = vpop.f32.mrb[13].mxu1 }
 0x64f   :  { %v1018_v10 = vsel %vm357_vm4, %v1016_v8, -inf  ;;  %v1556_v9 = vld [vmem:[%s2906_s2] sm:$0xff] }
 0x650   :  { %1019 = vmax.xlane.f32.xlu0 %v1018_v10  ;;  %v1557_v10 = vld [vmem:[%s2906_s2 + $0x8] sm:$0xff] }
 0x653   :  { %1114 = vrot.lane.b32.xlu1 %v2485_v58, %s2324_s24 }
 0x657   :  { %1272 = vrot.lane.b32.xlu1 %v2482_v57, %s2325_s0 }
 0x65b   :  { %1270 = vrot.lane.b32.xlu1 %v2498_v62, %s2326_s25 }
 0x666   :  { %1194 = vrot.lane.b32.xlu0 %v2477_v55, %s2325_s0 }
 0x66a   :  { %1192 = vrot.lane.b32.xlu0 %v2489_v60, %s2326_s25 }
 0x6cf   :  { %v1023_v11 = vpop.xlane.xlu1 %1022 }
 0x6d0   :  { %v1025_v12 = vsub.f32 %v1017_v61, %v1023_v11 }
 0x6d2   :  { %v1028_v13 = vmul.f32 1.442695, %v1025_v12  ;;  %v1558_v12 = vld [vmem:[%s2906_s2 + $0x10] sm:$0xff] }
 0x6d3   :  { %v1115_v14 = vpop.permute.xlu1 %1114 }
 0x6d4   :  { %2266 = vpow2.f32 %v1028_v13  ;;  %2119 = vmatpush3.msra.mxu0 %v1115_v14  ;;  %v1559_v13 = vld [vmem:[%s2906_s2 + $0x18] sm:$0xff]  ;;  %v1560_v14 = vld [vmem:[%s2906_s2 + $0x20] sm:$0xff] }
 0x6d5   :  { %2128 = vmatprep.subr.mxu0 %v2318_v33 }
 0x6d7   :  { %v1273_v15 = vpop.permute.xlu1 %1272 }
 0x6db   :  { %v1271_v55 = vpop.permute.xlu1 %1270 }
 0x6dd   :  { %v1020_v57 = vpop.xlane.xlu0 %1019 }
 0x6de   :  { %v2267_v16 = vpop.eup %2266  ;;  %v1024_v17 = vsub.f32 %v1016_v8, %v1020_v57  ;;  %v1561_v57 = vld [vmem:[%s2906_s2 + $0x28] sm:$0xff] }
 0x6df   :  { %2121 = vmatmul.mubr.msk.f32.vlgmr.msra.gmra.mrb[10].mxu0 %vm357_vm4, %v2267_v16  ;;  %v1033_v39 = vsel %vm357_vm4, %v2267_v16, 0.0  ;;  %v2186_v16 = vpack.c.bf16 %v1561_v57, %v1560_v14  ;;  %v1702_v14 = vld [vmem:[%s2908_s4 + $0x20] sm:$0xff] }
 0x6e0   :  { %v1026_v62 = vmul.f32 1.442695, %v1024_v17  ;;  %2129 = vmatpush3.xpose.msk.msra.mxu0 %vm199_vm2, %v1273_v15  ;;  %2130 = vmatprep.mubr.msk.f32.mxu0 %vm2319_vm1, %v2318_v33  ;;  %v2182_v15 = vpack.c.bf16 %v1559_v13, %v1558_v12  ;;  %v1562_v17 = vld [vmem:[%s2906_s2 + $0x30] sm:$0xff]  ;;  %v1705_v12 = vld [vmem:[%s2908_s4 + $0x38] sm:$0xff] }
 0x6e1   :  { %2138 = vmatprep.subr.mxu0 %v2318_v33  ;;  %v1195_v60 = vpop.permute.xlu0 %1194 }
 0x6e2   :  { %2268 = vpow2.f32 %v1026_v62  ;;  %v1563_v62 = vld [vmem:[%s2906_s2 + $0x38] sm:$0xff] }
 0x6e3   :  { %2131 = vmatmul.mubr.msk.f32.vlgmr.msra.gmra.mrb[12].mxu0 %vm199_vm2, %v1271_v55  ;;  %v2190_v55 = vpack.c.bf16 %v1563_v62, %v1562_v17  ;;  %v1709_v17 = vld [vmem:[%s2908_s4 + $0x58] sm:$0xff] }
 0x6e4   :  { %2140 = vmatprep.mubr.msk.f32.mxu0 %vm2319_vm1, %v2318_v33 }
 0x6e5   :  { %v1193_v19 = vpop.permute.xlu0 %1192 }
 0x6ec   :  { %v2269_v18 = vpop.eup %2268 }
 0x6ed   :  { %2116 = vmatmul.mubr.msk.f32.vlgmr.msra.gmra.mrb[14].mxu1 %vm357_vm4, %v2269_v18  ;;  %v1030_v4 = vsel %vm357_vm4, %v2269_v18, 0.0 }
 0x6ee   :  { %2124 = vmatpush3.xpose.msk.msra.mxu1 %vm199_vm2, %v1195_v60  ;;  %2125 = vmatprep.mubr.msk.f32.mxu1 %vm2319_vm1, %v2318_v33 }
 0x6ef   :  { %2133 = vmatprep.subr.mxu1 %v2318_v33 }
 0x6f1   :  { %2126 = vmatmul.mubr.msk.f32.vlgmr.msra.gmra.mrb[16].mxu1 %vm199_vm2, %v1193_v19 }
 0x6f2   :  { %2135 = vmatprep.mubr.msk.f32.mxu1 %vm2319_vm1, %v2318_v33 }
 0x7b2   :  { %v2634_v20 = vpop.f32.mrb[10].mxu0 }
 0x7b3   :  { %v2122_v21 = vpop.f32.mrb[11].mxu0 }
 0x7b6   :  { %v1344_v23 = vpop.f32.mrb[12].mxu0 }
 0x7b7   :  { %v1349_v25 = vsel %vm2510_vm3, %v1344_v23, -inf  ;;  %v2132_v26 = vpop.f32.mrb[13].mxu0 }
 0x7b8   :  { %v1353_v27 = vsel %vm357_vm4, %v1349_v25, -inf }
 0x7b9   :  { %1354 = vmax.xlane.f32.xlu1 %v1353_v27 }
 0x7c0   :  { %v1110_v28 = vpop.f32.mrb[14].mxu1 }
 0x7c1   :  { %v2117_v29 = vpop.f32.mrb[15].mxu1 }
 0x7c4   :  { %v1266_v30 = vpop.f32.mrb[16].mxu1 }
 0x7c5   :  { %v1348_v32 = vsel %vm2510_vm3, %v1266_v30, -inf  ;;  %v2127_v35 = vpop.f32.mrb[17].mxu1 }
 0x7c6   :  { %v1350_v36 = vsel %vm357_vm4, %v1348_v32, -inf }
 0x7c7   :  { %1351 = vmax.xlane.f32.xlu0 %v1350_v36 }
 0x7ca   :  { %1446 = vrot.lane.b32.xlu1 %v2485_v58, %s2326_s25 }
 0x7dd   :  { %1370 = vrot.lane.b32.xlu0 %v2480_v56, %s2326_s25 }
 0x7ee   :  { %700 = vadd.xlane.f32.xlu1 %v699_v37 }
 0x7fc   :  { %697 = vadd.xlane.f32.xlu0 %v696_v38 }
 0x800   :  { %1031 = vadd.xlane.f32.xlu0 %v1030_v4 }
 0x804   :  { %1034 = vadd.xlane.f32.xlu0 %v1033_v39 }
 0x846   :  { %v1355_v40 = vpop.xlane.xlu1 %1354 }
 0x847   :  { %v1357_v41 = vsub.f32 %v1349_v25, %v1355_v40 }
 0x849   :  { %v1360_v58 = vmul.f32 1.442695, %v1357_v41 }
 0x84a   :  { %v1447_v42 = vpop.permute.xlu1 %1446 }
 0x84b   :  { %2270 = vpow2.f32 %v1360_v58  ;;  %2139 = vmatpush3.msra.mxu0 %v1447_v42 }
 0x854   :  { %v1352_v56 = vpop.xlane.xlu0 %1351 }
 0x855   :  { %v2271_v43 = vpop.eup %2270  ;;  %v1356_v44 = vsub.f32 %v1348_v32, %v1352_v56 }
 0x856   :  { %2141 = vmatmul.mubr.msk.f32.vlgmr.msra.gmra.mrb[14].mxu0 %vm357_vm4, %v2271_v43  ;;  %v1365_v45 = vsel %vm357_vm4, %v2271_v43, 0.0 }
 0x857   :  { %v1358_v46 = vmul.f32 1.442695, %v1356_v44  ;;  %1366 = vadd.xlane.f32.xlu1 %v1365_v45 }
 0x858   :  { %v1371_v47 = vpop.permute.xlu0 %1370 }
 0x859   :  { %2272 = vpow2.f32 %v1358_v46  ;;  %2134 = vmatpush3.msra.mxu1 %v1371_v47 }
 0x85b   :  { %374 = vadd.xlane.f32.xlu1 %v373_v48 }
 0x863   :  { %v2273_v49 = vpop.eup %2272 }
 0x864   :  { %2136 = vmatmul.mubr.msk.f32.vlgmr.msra.gmra.mrb[18].mxu1 %vm357_vm4, %v2273_v49  ;;  %v1362_v50 = vsel %vm357_vm4, %v2273_v49, 0.0 }
 0x865   :  { %1363 = vadd.xlane.f32.xlu0 %v1362_v50 }
 0x869   :  { %371 = vadd.xlane.f32.xlu0 %v370_v51 }
 0x87b   :  { %v701_v52 = vpop.xlane.xlu1 %700 }
 0x87c   :  { %2274 = vrcp.f32 %v701_v52 }
 0x886   :  { %v2275_v54 = vpop.eup %2274 }
 0x887   :  { %v859_v59 = vmul.f32 %v2275_v54, %v2597_v53 }
 0x889   :  { %v698_v61 = vpop.xlane.xlu0 %697  ;;  %1528 = vrot.lane.b32.xlu1 %v859_v59, %s2325_s0 }
 0x88a   :  { %2276 = vrcp.f32 %v698_v61 }
 0x88d   :  { %v1032_v24 = vpop.xlane.xlu0 %1031 }
 0x88e   :  { %2278 = vrcp.f32 %v1032_v24 }
 0x891   :  { %v1035_v63 = vpop.xlane.xlu0 %1034 }
 0x892   :  { %2280 = vrcp.f32 %v1035_v63 }
 0x894   :  { %v2277_v3 = vpop.eup %2276 }
 0x895   :  { %v858_v6 = vmul.f32 %v2277_v3, %v2602_v5  ;;  %v2178_v5 = vpack.c.bf16 %v1557_v10, %v1556_v9  ;;  %v1698_v9 = vld [vmem:[%s2908_s4] sm:$0xff]  ;;  %v1700_v10 = vld [vmem:[%s2908_s4 + $0x10] sm:$0xff] }
 0x897   :  { %1526 = vrot.lane.b32.xlu0 %v858_v6, %s2325_s0  ;;  %2179 = vmatprep.subr.bf16.mxu0 %v2178_v5 }
 0x898   :  { %v2279_v22 = vpop.eup %2278  ;;  %2181 = vmatpush3.bf16.msra.mxu0 %v2178_v5  ;;  %v2196_v5 = vpack.c.bf16 %v1700_v10, %v1698_v9 }
 0x899   :  { %v1190_v7 = vmul.f32 %v2279_v22, %v1110_v28  ;;  %2183 = vmatprep.subr.bf16.mxu0 %v2182_v15 }
 0x89b   :  { %1534 = vrot.lane.b32.xlu1 %v1190_v7, %s2323_s23  ;;  %v1699_v7 = vld [vmem:[%s2908_s4 + $0x8] sm:$0xff] }
 0x89c   :  { %v2281_v8 = vpop.eup %2280  ;;  %2185 = vmatpush3.bf16.msra.mxu0 %v2182_v15  ;;  %v1704_v15 = vld [vmem:[%s2908_s4 + $0x30] sm:$0xff] }
 0x89d   :  { %v1191_v53 = vmul.f32 %v2281_v8, %v2634_v20  ;;  %2187 = vmatprep.subr.bf16.mxu0 %v2186_v16  ;;  %v1701_v8 = vld [vmem:[%s2908_s4 + $0x18] sm:$0xff]  ;;  %v2200_v57 = vpack.c.bf16 %v1704_v15, %v1702_v14 }
 0x89f   :  { %1536 = vrot.lane.b32.xlu1 %v1191_v53, %s2323_s23  ;;  %v2194_v53 = vpack.c.bf16 %v1701_v8, %v1699_v7  ;;  %v1824_v7 = vld [vmem:[%s2910_s6 + $0x58] sm:$0xff]  ;;  %v1841_v8 = vld [vmem:[%s2910_s6 + $0xe0] sm:$0xff]  ;;  %s1936_s23 = sshll.u32 %s2327_s22, 4  ;;  %s1937_s23 = int_to_ptr.vmem [resolvable:$true] %s1936_s23 }
 0x8a0   :  { %2189 = vmatpush3.bf16.msra.mxu0 %v2186_v16  ;;  %v1707_v16 = vld [vmem:[%s2908_s4 + $0x48] sm:$0xff]  ;;  %s2294_s24 = scalar_lea.vmem %s1937_s23, 256  ;;  %p2299_p1 = scmp.lt.s32.totalorder %s1937_s23, %s1937_s23 }
 0x8a1   :  { %2191 = vmatprep.subr.bf16.mxu0 %v2190_v55  ;;  %v2202_v62 = vpack.c.bf16 %v1709_v17, %v1707_v16  ;;  %v1978_v16 = vld [vmem:[%s2914_s10] ss:$0 sm:$0xff]  ;;  %p2295_p0 = scmp.ne.s32.totalorder %s1937_s23, %s2294_s24  ;;  %p2300_p2 = scmp.lt.s32.totalorder %s2294_s24, %s2294_s24 }
 0x8a3   :  { %p2301_p3 = por %p2300_p2, %p2299_p1 }
 0x8a4   :  { %2193 = vmatpush3.bf16.msra.mxu0 %v2190_v55  ;;  %v1706_v55 = vld [vmem:[%s2908_s4 + $0x40] sm:$0xff] }
 0x8a5   :  { %2195 = vmatprep.subr.bf16.mxu0 %v2194_v53  ;;  %v1842_v53 = vld [vmem:[%s2910_s6 + $0xe8] sm:$0xff]  ;;  %p2302_p4 = pnand %p2301_p3, %p2295_p0 }
 0x8a6   :  { %v2234_v10 = vpack.c.bf16 %v1842_v53, %v1841_v8 }
 0x8e4   :  { %v1367_v11 = vpop.xlane.xlu1 %1366 }
 0x8e5   :  { %2282 = vrcp.f32 %v1367_v11  ;;  %v1703_v11 = vld [vmem:[%s2908_s4 + $0x28] sm:$0xff] }
 0x8e6   :  { %v2198_v13 = vpack.c.bf16 %v1705_v12, %v1703_v11 }
 0x8e8   :  { %v375_v28 = vpop.xlane.xlu1 %374 }
 0x8ef   :  { %v2283_v60 = vpop.eup %2282 }
 0x8f2   :  { %v1364_v19 = vpop.xlane.xlu0 %1363 }
 0x8f3   :  { %2284 = vrcp.f32 %v1364_v19  ;;  %v1711_v19 = vld [vmem:[%s2908_s4 + $0x68] sm:$0xff] }
 0x8f6   :  { %v372_v29 = vpop.xlane.xlu0 %371 }
 0x8f7   :  { %2286 = vrcp.f32 %v372_v29  ;;  %v1813_v29 = vld [vmem:[%s2910_s6] sm:$0xff] }
 0x8f8   :  { %2288 = vrcp.f32 %v375_v28  ;;  %v1830_v28 = vld [vmem:[%s2910_s6 + $0x88] sm:$0xff] }
 0x8fb   :  { %v1529_v30 = vpop.permute.xlu1 %1528 }
 0x8fd   :  { %v2285_v23 = vpop.eup %2284 }
 0x901   :  { %v2287_v35 = vpop.eup %2286 }
 0x902   :  { %v2289_v36 = vpop.eup %2288  ;;  %v524_v4 = vmul.f32 %v2287_v35, %v2557_v31  ;;  %v1975_v31 = vld [vmem:[%s2907_s3] ss:$0 sm:$0xff]  ;;  %v1831_v35 = vld [vmem:[%s2910_s6 + $0x90] sm:$0xff] }
 0x903   :  { %v525_v39 = vmul.f32 %v2289_v36, %v2559_v34  ;;  %v1832_v36 = vld [vmem:[%s2910_s6 + $0x98] sm:$0xff] }
 0x905   :  { %v1549_v58 = vsel %vm199_vm2, %v525_v39, %v1529_v30  ;;  %v1816_v39 = vld [vmem:[%s2910_s6 + $0x18] sm:$0xff] }
 0x909   :  { %v1527_v38 = vpop.permute.xlu0 %1526 }
 0x90a   :  { %v1548_v40 = vsel %vm199_vm2, %v524_v4, %v1527_v38  ;;  %v2214_v38 = vpack.c.bf16 %v1832_v36, %v1831_v35  ;;  %v1815_v4 = vld [vmem:[%s2910_s6 + $0x10] sm:$0xff]  ;;  %v1722_v35 = vsub.s32 1, %v2507_v2 }
 0x90d   :  { %v1535_v32 = vpop.permute.xlu1 %1534 }
 0x90e   :  { %v1551_v42 = vsel %vm1550_vm5, %v1548_v40, %v1535_v32  ;;  %v1814_v32 = vld [vmem:[%s2910_s6 + $0x8] sm:$0xff]  ;;  %v1833_v40 = vld [vmem:[%s2910_s6 + $0xa0] sm:$0xff] }
 0x911   :  { %v1537_v37 = vpop.permute.xlu1 %1536 }
 0x912   :  { %v1552_v43 = vsel %vm1550_vm5, %v1549_v58, %v1537_v37  ;;  %v2212_v37 = vpack.c.bf16 %v1814_v32, %v1813_v29  ;;  %v2216_v58 = vpack.c.bf16 %v1816_v39, %v1815_v4  ;;  %v1714_v32 = vld [vmem:[%s2909_s5] sm:$0x3] }
 0x929   :  { %v1518_v18 = vpop.f32.mrb[14].mxu0 }
 0x92a   :  { %v1523_v20 = vmul.f32 %v2283_v60, %v1518_v18  ;;  %v2142_v21 = vpop.f32.mrb[15].mxu0  ;;  %v1708_v60 = vld [vmem:[%s2908_s4 + $0x50] sm:$0xff] }
 0x92b   :  { %v2204_v18 = vpack.c.bf16 %v1708_v60, %v1706_v55  ;;  %v1710_v21 = vld [vmem:[%s2908_s4 + $0x60] sm:$0xff] }
 0x92c   :  { %1544 = vrot.lane.b32.xlu1 %v1523_v20, %s2321_s9  ;;  %v1713_v20 = vld [vmem:[%s2908_s4 + $0x78] sm:$0xff] }
 0x937   :  { %v1442_v25 = vpop.f32.mrb[18].mxu1 }
 0x938   :  { %v1522_v26 = vmul.f32 %v2285_v23, %v1442_v25  ;;  %v2137_v27 = vpop.f32.mrb[19].mxu1  ;;  %v2206_v23 = vpack.c.bf16 %v1713_v20, %v1711_v19  ;;  %v1712_v25 = vld [vmem:[%s2908_s4 + $0x70] sm:$0xff] }
 0x939   :  { %v1829_v27 = vld [vmem:[%s2910_s6 + $0x80] sm:$0xff] }
 0x93a   :  { %1542 = vrot.lane.b32.xlu0 %v1522_v26, %s2321_s9  ;;  %v2208_v26 = vpack.c.bf16 %v1712_v25, %v1710_v21  ;;  %v2210_v30 = vpack.c.bf16 %v1830_v28, %v1829_v27  ;;  %v1827_v27 = vld [vmem:[%s2910_s6 + $0x70] sm:$0xff]  ;;  %v1828_v28 = vld [vmem:[%s2910_s6 + $0x78] sm:$0xff] }
 0x93b   :  { %v2240_v29 = vpack.c.bf16 %v1828_v28, %v1827_v27 }
 0x93c   :  { %2211 = vmatprep.subr.bf16.mxu1 %v2210_v30  ;;  %v1718_v30 = vsub.s32 0, %v2507_v2  ;;  %v1982_v2 = vld [vmem:[%s2911_s7] ss:$0 sm:$0xff] }
 0x93d   :  { %2213 = vmatpush3.bf16.msra.mxu1 %v2212_v37  ;;  %v1723_v37 = vrot.slane %v1714_v32, %v1722_v35 }
 0x93e   :  { %2215 = vmatprep.subr.bf16.mxu1 %v2214_v38  ;;  %v1719_v36 = vrot.slane %v1714_v32, %v1718_v30 }
 0x941   :  { %2217 = vmatpush3.bf16.msra.mxu1 %v2216_v58 }
 0x99e   :  { %v1545_v41 = vpop.permute.xlu1 %1544 }
 0x99f   :  { %v1555_v45 = vsel %vm1553_vm6, %v1552_v43, %v1545_v41  ;;  %v1834_v41 = vld [vmem:[%s2910_s6 + $0xa8] sm:$0xff] }
 0x9a0   :  { %v1818_v43 = vld [vmem:[%s2910_s6 + $0x28] sm:$0xff] }
 0x9ac   :  { %v1543_v56 = vpop.permute.xlu0 %1542 }
 0x9ad   :  { %v1554_v44 = vsel %vm1553_vm6, %v1551_v42, %v1543_v56  ;;  %v2218_v42 = vpack.c.bf16 %v1834_v41, %v1833_v40  ;;  %v1817_v56 = vld [vmem:[%s2910_s6 + $0x20] sm:$0xff] }
 0x9ae   :  { %2159 = vmatprep.mubr.msk.f32.mxu0 %vm44_vm0, %v1554_v44  ;;  %v1835_v44 = vld [vmem:[%s2910_s6 + $0xb0] sm:$0xff] }
 0x9af   :  { %2160 = vmatmul.mubr.msk.f32.vlgmr.msra.gmra.mrb[16].mxu0 %vm44_vm0, %v1555_v45  ;;  %v1836_v45 = vld [vmem:[%s2910_s6 + $0xb8] sm:$0xff]  ;;  %2219 = vmatprep.subr.bf16.mxu1 %v2218_v42 }
 0x9b0   :  { %1796 = vmatprep.mubr.f32.mxu0 %v2318_v33  ;;  %2197 = vmatpush1.bf16.msra.mxu0 %v2196_v5 }
 0x9b1   :  { %2199 = vmatprep.subr.bf16.mxu0 %v2198_v13 }
 0x9b4   :  { %2201 = vmatpush1.bf16.msra.mxu0 %v2200_v57 }
 0x9b5   :  { %2203 = vmatprep.subr.bf16.mxu0 %v2202_v62  ;;  %v1979_v62 = vld [vmem:[%s2915_s11] ss:$0 sm:$0xff] }
 0x9b8   :  { %2205 = vmatpush1.bf16.msra.mxu0 %v2204_v18 }
 0x9b9   :  { %2207 = vmatprep.subr.bf16.mxu0 %v2206_v23  ;;  %v1826_v23 = vld [vmem:[%s2910_s6 + $0x68] sm:$0xff] }
 0x9bc   :  { %2209 = vmatpush1.bf16.msra.mxu0 %v2208_v26 }
 0xa82   :  { %v2161_v34 = vpop.f32.mrb[16].mxu0 }
 0xa83   :  { %v1649_v46 = vadd.f32 %v2161_v34, %v1975_v31  ;;  %v1643_v47 = vpop.f32.mrb[17].mxu0  ;;  %v2222_v34 = vpack.c.bf16 %v1836_v45, %v1835_v44 }
 0xa84   :  { %v1644_v48 = vadd.f32 %v1975_v31, %v1643_v47  ;;  %v2220_v31 = vpack.c.bf16 %v1818_v43, %v1817_v56  ;;  %v1820_v47 = vld [vmem:[%s2910_s6 + $0x38] sm:$0xff] }
 0xa85   :  { %v2704_v49 = vadd.f32 %v1649_v46, %v2403_v1  ;;  %v1819_v46 = vld [vmem:[%s2910_s6 + $0x30] sm:$0xff] }
 0xa86   :  { %v2707_v50 = vadd.f32 %v1644_v48, %v2398_v0  ;;  %v1837_v48 = vld [vmem:[%s2910_s6 + $0xc0] sm:$0xff]  ;;  %2221 = vmatpush3.bf16.msra.mxu1 %v2220_v31 }
 0xa87   :  { %v1657_v51 = vsel %vm44_vm0, %v2704_v49, 0.0  ;;  %2223 = vmatprep.subr.bf16.mxu1 %v2222_v34 }
 0xa88   :  { %1658 = vadd.xlane.f32.xlu1 %v1657_v51  ;;  %v1654_v52 = vsel %vm44_vm0, %v2707_v50, 0.0  ;;  %v1838_v51 = vld [vmem:[%s2910_s6 + $0xc8] sm:$0xff] }
 0xa89   :  { %1655 = vadd.xlane.f32.xlu0 %v1654_v52  ;;  %v2224_v52 = vpack.c.bf16 %v1820_v47, %v1819_v46 }
 0xa8b   :  { %2225 = vmatpush3.bf16.msra.mxu1 %v2224_v52 }
 0xb15   :  { %v1659_v54 = vpop.xlane.xlu1 %1658 }
 0xb16   :  { %v1661_v59 = vmul.f32 0.015625, %v1659_v54  ;;  %v1656_v61 = vpop.xlane.xlu0 %1655  ;;  %v2226_v54 = vpack.c.bf16 %v1838_v51, %v1837_v48 }
 0xb17   :  { %v1660_v24 = vmul.f32 0.015625, %v1656_v61  ;;  %v1822_v61 = vld [vmem:[%s2910_s6 + $0x48] sm:$0xff] }
 0xb18   :  { %v2714_v63 = vsub.f32 %v2704_v49, %v1661_v59  ;;  %v1821_v59 = vld [vmem:[%s2910_s6 + $0x40] sm:$0xff]  ;;  %2227 = vmatprep.subr.bf16.mxu1 %v2226_v54 }
 0xb19   :  { %v2717_v1 = vsub.f32 %v2707_v50, %v1660_v24  ;;  %v1839_v24 = vld [vmem:[%s2910_s6 + $0xd0] sm:$0xff] }
 0xb1a   :  { %v1665_v6 = vmul.f32 %v2714_v63, %v2714_v63 }
 0xb1b   :  { %v1664_v0 = vmul.f32 %v2717_v1, %v2717_v1 }
 0xb1c   :  { %v1669_v22 = vsel %vm44_vm0, %v1665_v6, 0.0 }
 0xb1d   :  { %v1666_v3 = vsel %vm44_vm0, %v1664_v0, 0.0  ;;  %v1840_v0 = vld [vmem:[%s2910_s6 + $0xd8] sm:$0xff] }
 0xb1e   :  { %1667 = vadd.xlane.f32.xlu0 %v1666_v3  ;;  %v2228_v3 = vpack.c.bf16 %v1822_v61, %v1821_v59  ;;  %v2230_v6 = vpack.c.bf16 %v1840_v0, %v1839_v24 }
 0xb20   :  { %2229 = vmatpush3.bf16.msra.mxu1 %v2228_v3 }
 0xb21   :  { %2231 = vmatprep.subr.bf16.mxu1 %v2230_v6 }
 0xb22   :  { %1670 = vadd.xlane.f32.xlu0 %v1669_v22  ;;  %v1823_v22 = vld [vmem:[%s2910_s6 + $0x50] sm:$0xff] }
 0xb23   :  { %v2232_v9 = vpack.c.bf16 %v1824_v7, %v1823_v22 }
 0xb25   :  { %2233 = vmatpush3.bf16.msra.mxu1 %v2232_v9 }
 0xb26   :  { %2235 = vmatprep.subr.bf16.mxu1 %v2234_v10 }
 0xbab   :  { %v1668_v5 = vpop.xlane.xlu0 %1667 }
 0xbac   :  { %v1672_v11 = vmul.f32 0.015625, %v1668_v5 }
 0xbae   :  { %v1674_v12 = vadd.f32 1e-05, %v1672_v11 }
 0xbaf   :  { %v1671_v13 = vpop.xlane.xlu0 %1670 }
 0xbb0   :  { %2290 = vrsqrt.f32 %v1674_v12  ;;  %v1673_v14 = vmul.f32 0.015625, %v1671_v13 }
 0xbb2   :  { %v1675_v15 = vadd.f32 1e-05, %v1673_v14 }
 0xbb4   :  { %2292 = vrsqrt.f32 %v1675_v15 }
 0xbba   :  { %v2291_v57 = vpop.eup %2290 }
 0xbbb   :  { %v1678_v17 = vmul.f32 %v2291_v57, %v2717_v1  ;;  %v1825_v1 = vld [vmem:[%s2910_s6 + $0x60] sm:$0xff] }
 0xbbc   :  { %v2236_v25 = vpack.c.bf16 %v1826_v23, %v1825_v1 }
 0xbbd   :  { %v1687_v55 = vmul.f32 %v1978_v16, %v1678_v17 }
 0xbbe   :  { %v2293_v60 = vpop.eup %2292  ;;  %2237 = vmatpush3.bf16.msra.mxu1 %v2236_v25 }
 0xbbf   :  { %v1696_v18 = vadd.f32 %v1979_v62, %v1687_v55  ;;  %v1679_v19 = vmul.f32 %v2293_v60, %v2714_v63  ;;  %v1843_v63 = vld [vmem:[%s2910_s6 + $0xf0] sm:$0xff] }
 0xbc1   :  { %1980 = vmatmul.mubr.msk.f32.vlgmr.msra.gmra.mrb[18].mxu0 %vm44_vm0, %v1696_v18  ;;  %v1688_v20 = vmul.f32 %v1978_v16, %v1679_v19 }
 0xbc2   :  { %1802 = vmatprep.mubr.f32.mxu0 %v2318_v33  ;;  %v1844_v33 = vld [vmem:[%s2910_s6 + $0xf8] sm:$0xff] }
 0xbc3   :  { %v1697_v21 = vadd.f32 %v1979_v62, %v1688_v20  ;;  %v2238_v26 = vpack.c.bf16 %v1844_v33, %v1843_v63 }
 0xbc5   :  { %1981 = vmatmul.mubr.msk.f32.gmra.mrb[20].mxu0 %vm44_vm0, %v1697_v21  ;;  %2239 = vmatprep.subr.bf16.mxu1 %v2238_v26 }
 0xbc6   :  { %2241 = vmatpush3.bf16.msra.mxu1 %v2240_v29 }
 0xc94   :  { %v1798_v38 = vpop.f32.mrb[18].mxu0 }
 0xc95   :  { %v1799_v4 = vadd.f32 %v1798_v38, %v1719_v36  ;;  %v1800_v39 = vpop.f32.mrb[19].mxu0 }
 0xc96   :  { %v1801_v40 = vadd.f32 %v1800_v39, %v1723_v37 }
 0xc97   :  { %v1809_v42 = vmax.f32 %v1799_v4, 0.0 }
 0xc98   :  { %v1810_v41 = vmax.f32 %v1801_v40, 0.0  ;;  %v1804_v58 = vpop.f32.mrb[20].mxu0 }
 0xc99   :  { %v1805_v56 = vadd.f32 %v1804_v58, %v1719_v36  ;;  %v1806_v43 = vpop.f32.mrb[21].mxu0 }
 0xc9a   :  { %v1807_v44 = vadd.f32 %v1806_v43, %v1723_v37  ;;  %1916 = vmatprep.mubr.f32.mxu1 %v1810_v41 }
 0xc9b   :  { %1917 = vmatmul.mubr.f32.vlgmr.msra.gmra.mrb[20].mxu1 %v1809_v42  ;;  %v1811_v31 = vmax.f32 %v1805_v56, 0.0 }
 0xc9c   :  { %v1812_v45 = vmax.f32 %v1807_v44, 0.0 }
 0xc9e   :  { %1921 = vmatprep.mubr.f32.mxu1 %v1812_v45 }
 0xc9f   :  { %1922 = vmatmul.mubr.f32.gmra.mrb[22].mxu1 %v1811_v31 }
 0xd6e   :  { %v2057_v34 = vpop.f32.mrb[20].mxu1 }
 0xd6f   :  { %v2058_v46 = vpop.f32.mrb[21].mxu1 }
 0xd70   :  { %v2059_v47 = vadd.f32 %v2058_v46, %v2057_v34 }
 0xd72   :  { %v1919_v48 = vadd.f32 %v2059_v47, %v1982_v2  ;;  %v2060_v51 = vpop.f32.mrb[22].mxu1 }
 0xd73   :  { %v2061_v52 = vpop.f32.mrb[23].mxu1 }
 0xd74   :  { %v1927_v54 = vadd.f32 %v1919_v48, %v2707_v50  ;;  %v2062_v59 = vadd.f32 %v2061_v52, %v2060_v51 }
 0xd76   :  { %1929 = vst.msk [vmem:[#allocation2] sm:$0xff] %vm44_vm0, %v1927_v54  ;;  %v1924_v61 = vadd.f32 %v2062_v59, %v1982_v2 }
 0xd78   :  { %v1928_v24 = vadd.f32 %v1924_v61, %v2704_v49 }
 0xd7a   :  { %1930 = vst.msk [vmem:[#allocation2 + $0x8] sm:$0xff] %vm44_vm0, %v1928_v24 }
 0xd7b   :  { %2305 = shalt.err (!%p2302_p4)
}
 0xd7c   :  { %s2306_s25 = scalar_lea.hbm %s2916_s12, 256 }
 0xd7d   :  { %p2307_p5 = scmp.ne.s32.totalorder %s2916_s12, %s2306_s25  ;;  %p2310_p6 = scmp.lt.u32.totalorder %s2306_s25, %s2916_s12 }
 0xd7f   :  { %p2312_p7 = pnand %p2310_p6, %p2307_p5 }
 0xd81   :  { %2315 = shalt.err (!%p2312_p7)
}
 0xd82   :  { %s2328_s30 = smov 128   ;;  %s2329_s13 = smov 8  }
 0xd83   :  { %1942 = dma.vmem_to_hbm [thread:$0]  %s1937_s23, 256, %s2916_s12, [#allocation3], %s2328_s30, %s2328_s30, %s2329_s13  }
 0xd84   :  { %2316 = dma.done.wait [#allocation3], 256  }
 0xd85   :  { %2317 = vsyncadd [#allocation3], 4294967040 }
 0xd86   :  { %1946 = vsyncpa [#allocation3], 1 }

</bundles_post_ra>
